<compile_context>
chip_gen: v6e
topology: v6e:2x2x1
jax: 0.10.0
libtpu: 0.0.40
codegen_flags: <defaults>
</compile_context>

<pallas_src>
import functools

import numpy as np
import jax
import jax.numpy as jnp
from jax import lax
from jax.experimental import pallas as pl
from jax.experimental.pallas import tpu as pltpu


def _interacting_kernel(x_ref, w_ref, b_ref, red_ref, o_ref, *, h, d_k, bm, f):
    H = h * d_k
    R = bm * f
    cdt = x_ref.dtype  # MXU input dtype (f32 or bf16); accumulation is f32

    # (bm, F, D) -> (bm*F, D): merge leading (sublane-major) dims, lanes intact.
    xf = x_ref[...].reshape(R, -1)

    # Single fused projection: [Q | K | V | Xp] = x @ [Wq|Wk|Wv|Wl] + [bq|bk|bv|bl]
    # One lane-full (N = 4H = 128) MXU pass, f32 accumulation.
    proj = jnp.dot(xf, w_ref[...], preferred_element_type=jnp.float32) + b_ref[...]

    q3 = proj[:, 0 * H:1 * H].reshape(bm, f, H)
    k3 = proj[:, 1 * H:2 * H].reshape(bm, f, H)
    v3 = proj[:, 2 * H:3 * H].reshape(bm, f, H)
    xp3 = proj[:, 3 * H:4 * H].reshape(bm, f, H)

    # ---- Attention scores without per-sample matmuls ---------------------
    # For each key position kk: broadcast K[:, kk, :] over the F query rows
    # (sublane broadcast) and multiply with Q on the VPU (both heads at once).
    # Concatenate the per-key products along lanes and reduce the d_k-wide
    # segments per head with ONE (R, F*H) @ (F*H, h*F) MXU matmul against a
    # constant 0/1 matrix:
    #   s_all[r, i*F + kk] = sum_d Q_i[r, d] * K_i[b(r), kk, d]
    prods = [(q3 * k3[:, kk:kk + 1, :]).reshape(R, H) for kk in range(f)]
    prod_all = jnp.concatenate(prods, axis=-1)                    # (R, F*H)
    s_all = jnp.dot(prod_all.astype(cdt), red_ref[...],
                    preferred_element_type=jnp.float32)           # (R, h*F)

    # NOTE: no 1/sqrt(d_k) scaling — matches the reference module; keep as-is.
    head_outs = []
    for i in range(h):
        s = s_all[:, i * f:(i + 1) * f]                           # (R, F)
        s = s - jnp.max(s, axis=-1, keepdims=True)
        e = jnp.exp(s)
        inv = 1.0 / jnp.sum(e, axis=-1, keepdims=True)            # exact reciprocal
        p = (e * inv).reshape(bm, f, f)                           # (bm, Fq, Fk)

        v_i = v3[:, :, i * d_k:(i + 1) * d_k]                     # (bm, F, d_k)
        # Start from the residual projection slice for this head (saves the
        # separate xp + att add afterwards).
        acc = xp3[:, :, i * d_k:(i + 1) * d_k]
        for kk in range(f):
            # lane-broadcast of the prob column, sublane-broadcast of the V row
            acc = acc + p[:, :, kk:kk + 1] * v_i[:, kk:kk + 1, :]
        head_outs.append(acc)

    out = jnp.concatenate(head_outs, axis=-1)                     # (bm, F, H)
    o_ref[...] = jnp.maximum(out, 0.0).astype(o_ref.dtype)


def interacting_layer(x, params, *, h, d_k, block_b=1024, use_bf16=True,
                      out_dtype=jnp.float32):
    """x: (B, F, d_model) float32.  params: pre-transposed (in_dim, out_dim) weights.

    use_bf16 feeds the MXU bf16 inputs (native on v5e/v6e/v7x); accumulation,
    bias add and softmax stay f32.  out_dtype=bf16 halves writeback traffic.
    """
    B, F, D = x.shape
    H = h * d_k

    # Fuse projection weights/biases: (D, 4H) and (1, 4H) -> lane-full matmul.
    w_all = jnp.concatenate(
        [params["wq"], params["wk"], params["wv"], params["wl"]], axis=1)
    b_all = jnp.concatenate(
        [params["bq"], params["bk"], params["bv"], params["bl"]], axis=1)

    in_dtype = jnp.bfloat16 if use_bf16 else jnp.float32
    # Callers that care about HBM traffic should hand x over already in bf16;
    # this cast is an extra XLA pass when x arrives as f32.
    x_in = x.astype(in_dtype)
    w_in = w_all.astype(in_dtype)
    b_in = b_all.astype(jnp.float32)   # bias add stays f32

    # Constant 0/1 score-reduction matrix: red[kk*H + i*d_k + d, i*F + kk] = 1.
    red = np.zeros((F * H, h * F), dtype=np.float32)
    for kk in range(F):
        for i in range(h):
            red[kk * H + i * d_k: kk * H + (i + 1) * d_k, i * F + kk] = 1.0
    red_in = jnp.asarray(red, dtype=in_dtype)

    # Batch blocking: pick n_blocks first (>= 2 when B > 1 so both v7x TCs get
    # work), then bm = ceil(B / n_blocks) so padding is at most n_blocks-1 rows.
    n_blocks = max(1 if B == 1 else 2, -(-B // block_b))
    bm = -(-B // n_blocks)
    B_pad = n_blocks * bm
    if B_pad != B:
        x_in = jnp.pad(x_in, ((0, B_pad - B), (0, 0), (0, 0)))

    kernel = functools.partial(_interacting_kernel, h=h, d_k=d_k, bm=bm, f=F)

    out = pl.pallas_call(
        kernel,
        out_shape=jax.ShapeDtypeStruct((B_pad, F, H), out_dtype),
        grid=(n_blocks,),
        in_specs=[
            pl.BlockSpec((bm, F, D), lambda b: (b, 0, 0)),    # x batch block
            pl.BlockSpec((D, 4 * H), lambda b: (0, 0)),       # fused weights (resident)
            pl.BlockSpec((1, 4 * H), lambda b: (0, 0)),       # fused biases  (resident)
            pl.BlockSpec((F * H, h * F), lambda b: (0, 0)),   # score-reduction matrix
        ],
        out_specs=pl.BlockSpec((bm, F, H), lambda b: (b, 0, 0)),
        compiler_params=pltpu.CompilerParams(
            dimension_semantics=("parallel",),
            vmem_limit_bytes=48 << 20),
    )(x_in, w_in, b_in, red_in)

    return out[:B] if B_pad != B else out


def reference_jax(x, params, *, h, d_k):
    """Pure-JAX reference mirroring the PyTorch module (HIGHEST precision)."""
    hp = lax.Precision.HIGHEST
    q = jnp.matmul(x, params["wq"], precision=hp) + params["bq"][0]
    k = jnp.matmul(x, params["wk"], precision=hp) + params["bk"][0]
    v = jnp.matmul(x, params["wv"], precision=hp) + params["bv"][0]
    xp = jnp.matmul(x, params["wl"], precision=hp) + params["bl"][0]
    B, F, _ = x.shape

    def split(t):  # (B, F, h*d_k) -> (B, h, F, d_k)
        return t.reshape(B, F, h, d_k).transpose(0, 2, 1, 3)

    qh, kh, vh = split(q), split(k), split(v)
    s = jnp.einsum("bhqd,bhkd->bhqk", qh, kh, precision=hp)   # no 1/sqrt(d_k), per module
    p = jax.nn.softmax(s, axis=-1)
    att = jnp.einsum("bhqk,bhkd->bhqd", p, vh, precision=hp)
    att = att.transpose(0, 2, 1, 3).reshape(B, F, h * d_k)
    return jnp.maximum(xp + att, 0.0)


def make_params(key, d_model, h, d_k):
    """Deterministic synthetic parameters (nn.Linear-style uniform init)."""
    H = h * d_k
    ks = jax.random.split(key, 8)
    lim = 1.0 / jnp.sqrt(jnp.float32(d_model))
    u = lambda k, shape: jax.random.uniform(k, shape, jnp.float32, -lim, lim)
    return {
        "wq": u(ks[0], (d_model, H)), "bq": u(ks[1], (1, H)),
        "wk": u(ks[2], (d_model, H)), "bk": u(ks[3], (1, H)),
        "wv": u(ks[4], (d_model, H)), "bv": u(ks[5], (1, H)),
        "wl": u(ks[6], (d_model, H)), "bl": u(ks[7], (1, H)),
    }


if __name__ == "__main__":
    # Small shapes consistent with the module: batch=2, features=8, d_model=32,
    # h=2 heads, d_head=16  ->  output (2, 8, 32).
    B, F, D = 2, 8, 32
    h, d_k = 2, 16

    key = jax.random.PRNGKey(0)
    kx, kp, kx2 = jax.random.split(key, 3)
    x = jax.random.normal(kx, (B, F, D), dtype=jnp.float32)
    params = make_params(kp, D, h, d_k)

    # --- f32 path, small batch (2 batch blocks of 1) ---
    out = interacting_layer(x, params, h=h, d_k=d_k, use_bf16=False)
    out = jax.block_until_ready(out)
    ref = reference_jax(x, params, h=h, d_k=d_k)
    assert out.shape == (B, F, h * d_k)
    assert jnp.allclose(out, ref, atol=2e-3, rtol=2e-3), "f32 mismatch vs JAX reference"

    # --- larger batch: exercises 2-way batch blocking (bm=32), the bf16 MXU
    #     input path and the bf16 output path; accumulation stays f32 ---
    B2 = 64
    x2 = jax.random.normal(kx2, (B2, F, D), dtype=jnp.float32)
    out2 = interacting_layer(x2, params, h=h, d_k=d_k, use_bf16=True,
                             out_dtype=jnp.bfloat16)
    out2 = jax.block_until_ready(out2)
    ref2 = reference_jax(x2, params, h=h, d_k=d_k)
    assert out2.shape == (B2, F, h * d_k)
    assert jnp.allclose(out2.astype(jnp.float32), ref2, atol=1e-1, rtol=1e-1), \
        "bf16 mismatch vs JAX reference"

    print("KERNEL_OK")
</pallas_src>

<mosaic_0001>
module attributes {stable_mosaic.version = 11 : i64} {
  func.func @_interacting_kernel(%arg0: i32, %arg1: memref<1x8x32xf32, #tpu.memory_space<vmem>>, %arg2: memref<32x128xf32, #tpu.memory_space<vmem>>, %arg3: memref<1x128xf32, #tpu.memory_space<vmem>>, %arg4: memref<256x16xf32, #tpu.memory_space<vmem>>, %arg5: memref<1x8x32xf32, #tpu.memory_space<vmem>>) attributes {dimension_semantics = [#tpu.dimension_semantics<parallel>], iteration_bounds = array<i64: 2>, scalar_prefetch = 0 : i64, scratch_operands = 0 : i64, tpu.core_type = #tpu.core_type<tc>, window_params = [{transform_indices = @transform_0, window_bounds = array<i64: 1, 8, 32>}, {pipeline_mode = #tpu.pipeline_mode<synchronous>, transform_indices = @transform_1, window_bounds = array<i64: 32, 128>}, {pipeline_mode = #tpu.pipeline_mode<synchronous>, transform_indices = @transform_2, window_bounds = array<i64: 1, 128>}, {pipeline_mode = #tpu.pipeline_mode<synchronous>, transform_indices = @transform_3, window_bounds = array<i64: 256, 16>}, {transform_indices = @transform_4, window_bounds = array<i64: 1, 8, 32>}]} {
    %c0 = arith.constant 0 : index
    %c0_0 = arith.constant 0 : index
    %c0_1 = arith.constant 0 : index
    %0 = vector.load %arg1[%c0, %c0_0, %c0_1] : memref<1x8x32xf32, #tpu.memory_space<vmem>>, vector<1x8x32xf32>
    %1 = vector.shape_cast %0 : vector<1x8x32xf32> to vector<8x32xf32>
    %c0_2 = arith.constant 0 : index
    %c0_3 = arith.constant 0 : index
    %2 = vector.load %arg2[%c0_2, %c0_3] : memref<32x128xf32, #tpu.memory_space<vmem>>, vector<32x128xf32>
    %cst = arith.constant dense<0.000000e+00> : vector<8x128xf32>
    %3 = tpu.matmul %1, %2, %cst {dimension_numbers = #tpu.dot_dimension_numbers<[1], [0], [0], [1], [0, 0, 1, 1], [], []>} : vector<8x32xf32>, vector<32x128xf32>, vector<8x128xf32> -> vector<8x128xf32>
    %c0_4 = arith.constant 0 : index
    %c0_5 = arith.constant 0 : index
    %4 = vector.load %arg3[%c0_4, %c0_5] : memref<1x128xf32, #tpu.memory_space<vmem>>, vector<1x128xf32>
    %5 = vector.broadcast %4 : vector<1x128xf32> to vector<8x128xf32>
    %6 = arith.addf %3, %5 : vector<8x128xf32>
    %7 = vector.extract_strided_slice %6 {offsets = [0, 0], sizes = [8, 32], strides = [1, 1]} : vector<8x128xf32> to vector<8x32xf32>
    %8 = vector.shape_cast %7 : vector<8x32xf32> to vector<1x8x32xf32>
    %9 = vector.extract_strided_slice %6 {offsets = [0, 32], sizes = [8, 32], strides = [1, 1]} : vector<8x128xf32> to vector<8x32xf32>
    %10 = vector.shape_cast %9 : vector<8x32xf32> to vector<1x8x32xf32>
    %11 = vector.extract_strided_slice %6 {offsets = [0, 64], sizes = [8, 32], strides = [1, 1]} : vector<8x128xf32> to vector<8x32xf32>
    %12 = vector.shape_cast %11 : vector<8x32xf32> to vector<1x8x32xf32>
    %13 = vector.extract_strided_slice %6 {offsets = [0, 96], sizes = [8, 32], strides = [1, 1]} : vector<8x128xf32> to vector<8x32xf32>
    %14 = vector.shape_cast %13 : vector<8x32xf32> to vector<1x8x32xf32>
    %15 = vector.extract_strided_slice %10 {offsets = [0, 0, 0], sizes = [1, 1, 32], strides = [1, 1, 1]} : vector<1x8x32xf32> to vector<1x1x32xf32>
    %16 = vector.broadcast %15 : vector<1x1x32xf32> to vector<1x8x32xf32>
    %17 = arith.mulf %8, %16 : vector<1x8x32xf32>
    %18 = vector.shape_cast %17 : vector<1x8x32xf32> to vector<8x32xf32>
    %19 = vector.extract_strided_slice %10 {offsets = [0, 1, 0], sizes = [1, 1, 32], strides = [1, 1, 1]} : vector<1x8x32xf32> to vector<1x1x32xf32>
    %20 = vector.broadcast %19 : vector<1x1x32xf32> to vector<1x8x32xf32>
    %21 = arith.mulf %8, %20 : vector<1x8x32xf32>
    %22 = vector.shape_cast %21 : vector<1x8x32xf32> to vector<8x32xf32>
    %23 = vector.extract_strided_slice %10 {offsets = [0, 2, 0], sizes = [1, 1, 32], strides = [1, 1, 1]} : vector<1x8x32xf32> to vector<1x1x32xf32>
    %24 = vector.broadcast %23 : vector<1x1x32xf32> to vector<1x8x32xf32>
    %25 = arith.mulf %8, %24 : vector<1x8x32xf32>
    %26 = vector.shape_cast %25 : vector<1x8x32xf32> to vector<8x32xf32>
    %27 = vector.extract_strided_slice %10 {offsets = [0, 3, 0], sizes = [1, 1, 32], strides = [1, 1, 1]} : vector<1x8x32xf32> to vector<1x1x32xf32>
    %28 = vector.broadcast %27 : vector<1x1x32xf32> to vector<1x8x32xf32>
    %29 = arith.mulf %8, %28 : vector<1x8x32xf32>
    %30 = vector.shape_cast %29 : vector<1x8x32xf32> to vector<8x32xf32>
    %31 = vector.extract_strided_slice %10 {offsets = [0, 4, 0], sizes = [1, 1, 32], strides = [1, 1, 1]} : vector<1x8x32xf32> to vector<1x1x32xf32>
    %32 = vector.broadcast %31 : vector<1x1x32xf32> to vector<1x8x32xf32>
    %33 = arith.mulf %8, %32 : vector<1x8x32xf32>
    %34 = vector.shape_cast %33 : vector<1x8x32xf32> to vector<8x32xf32>
    %35 = vector.extract_strided_slice %10 {offsets = [0, 5, 0], sizes = [1, 1, 32], strides = [1, 1, 1]} : vector<1x8x32xf32> to vector<1x1x32xf32>
    %36 = vector.broadcast %35 : vector<1x1x32xf32> to vector<1x8x32xf32>
    %37 = arith.mulf %8, %36 : vector<1x8x32xf32>
    %38 = vector.shape_cast %37 : vector<1x8x32xf32> to vector<8x32xf32>
    %39 = vector.extract_strided_slice %10 {offsets = [0, 6, 0], sizes = [1, 1, 32], strides = [1, 1, 1]} : vector<1x8x32xf32> to vector<1x1x32xf32>
    %40 = vector.broadcast %39 : vector<1x1x32xf32> to vector<1x8x32xf32>
    %41 = arith.mulf %8, %40 : vector<1x8x32xf32>
    %42 = vector.shape_cast %41 : vector<1x8x32xf32> to vector<8x32xf32>
    %43 = vector.extract_strided_slice %10 {offsets = [0, 7, 0], sizes = [1, 1, 32], strides = [1, 1, 1]} : vector<1x8x32xf32> to vector<1x1x32xf32>
    %44 = vector.broadcast %43 : vector<1x1x32xf32> to vector<1x8x32xf32>
    %45 = arith.mulf %8, %44 : vector<1x8x32xf32>
    %46 = vector.shape_cast %45 : vector<1x8x32xf32> to vector<8x32xf32>
    %47 = tpu.concatenate %18, %22, %26, %30, %34, %38, %42, %46 in 1 : vector<8x32xf32>, vector<8x32xf32>, vector<8x32xf32>, vector<8x32xf32>, vector<8x32xf32>, vector<8x32xf32>, vector<8x32xf32>, vector<8x32xf32> -> vector<8x256xf32>
    %c0_6 = arith.constant 0 : index
    %c0_7 = arith.constant 0 : index
    %48 = vector.load %arg4[%c0_6, %c0_7] : memref<256x16xf32, #tpu.memory_space<vmem>>, vector<256x16xf32>
    %cst_8 = arith.constant dense<0.000000e+00> : vector<8x16xf32>
    %49 = tpu.matmul %47, %48, %cst_8 {dimension_numbers = #tpu.dot_dimension_numbers<[1], [0], [0], [1], [0, 0, 1, 1], [], []>} : vector<8x256xf32>, vector<256x16xf32>, vector<8x16xf32> -> vector<8x16xf32>
    %50 = vector.extract_strided_slice %49 {offsets = [0, 0], sizes = [8, 8], strides = [1, 1]} : vector<8x16xf32> to vector<8x8xf32>
    %cst_9 = arith.constant dense<0xFF800000> : vector<8xf32>
    %51 = vector.multi_reduction <maximumf>, %50, %cst_9 [1] : vector<8x8xf32> to vector<8xf32>
    %52 = vector.shape_cast %51 : vector<8xf32> to vector<8x1xf32>
    %53 = vector.broadcast %52 : vector<8x1xf32> to vector<8x8xf32>
    %54 = arith.subf %50, %53 : vector<8x8xf32>
    %55 = math.exp %54 : vector<8x8xf32>
    %cst_10 = arith.constant dense<0.000000e+00> : vector<8xf32>
    %56 = vector.multi_reduction <add>, %55, %cst_10 [1] : vector<8x8xf32> to vector<8xf32>
    %57 = vector.shape_cast %56 : vector<8xf32> to vector<8x1xf32>
    %cst_11 = arith.constant 1.000000e+00 : f32
    %58 = vector.broadcast %cst_11 : f32 to vector<8x1xf32>
    %59 = arith.divf %58, %57 : vector<8x1xf32>
    %60 = vector.broadcast %59 : vector<8x1xf32> to vector<8x8xf32>
    %61 = arith.mulf %55, %60 : vector<8x8xf32>
    %62 = vector.shape_cast %61 : vector<8x8xf32> to vector<1x8x8xf32>
    %63 = vector.extract_strided_slice %12 {offsets = [0, 0, 0], sizes = [1, 8, 16], strides = [1, 1, 1]} : vector<1x8x32xf32> to vector<1x8x16xf32>
    %64 = vector.extract_strided_slice %14 {offsets = [0, 0, 0], sizes = [1, 8, 16], strides = [1, 1, 1]} : vector<1x8x32xf32> to vector<1x8x16xf32>
    %65 = vector.extract_strided_slice %62 {offsets = [0, 0, 0], sizes = [1, 8, 1], strides = [1, 1, 1]} : vector<1x8x8xf32> to vector<1x8x1xf32>
    %66 = vector.extract_strided_slice %63 {offsets = [0, 0, 0], sizes = [1, 1, 16], strides = [1, 1, 1]} : vector<1x8x16xf32> to vector<1x1x16xf32>
    %67 = vector.broadcast %65 : vector<1x8x1xf32> to vector<1x8x16xf32>
    %68 = vector.broadcast %66 : vector<1x1x16xf32> to vector<1x8x16xf32>
    %69 = arith.mulf %67, %68 : vector<1x8x16xf32>
    %70 = arith.addf %64, %69 : vector<1x8x16xf32>
    %71 = vector.extract_strided_slice %62 {offsets = [0, 0, 1], sizes = [1, 8, 1], strides = [1, 1, 1]} : vector<1x8x8xf32> to vector<1x8x1xf32>
    %72 = vector.extract_strided_slice %63 {offsets = [0, 1, 0], sizes = [1, 1, 16], strides = [1, 1, 1]} : vector<1x8x16xf32> to vector<1x1x16xf32>
    %73 = vector.broadcast %71 : vector<1x8x1xf32> to vector<1x8x16xf32>
    %74 = vector.broadcast %72 : vector<1x1x16xf32> to vector<1x8x16xf32>
    %75 = arith.mulf %73, %74 : vector<1x8x16xf32>
    %76 = arith.addf %70, %75 : vector<1x8x16xf32>
    %77 = vector.extract_strided_slice %62 {offsets = [0, 0, 2], sizes = [1, 8, 1], strides = [1, 1, 1]} : vector<1x8x8xf32> to vector<1x8x1xf32>
    %78 = vector.extract_strided_slice %63 {offsets = [0, 2, 0], sizes = [1, 1, 16], strides = [1, 1, 1]} : vector<1x8x16xf32> to vector<1x1x16xf32>
    %79 = vector.broadcast %77 : vector<1x8x1xf32> to vector<1x8x16xf32>
    %80 = vector.broadcast %78 : vector<1x1x16xf32> to vector<1x8x16xf32>
    %81 = arith.mulf %79, %80 : vector<1x8x16xf32>
    %82 = arith.addf %76, %81 : vector<1x8x16xf32>
    %83 = vector.extract_strided_slice %62 {offsets = [0, 0, 3], sizes = [1, 8, 1], strides = [1, 1, 1]} : vector<1x8x8xf32> to vector<1x8x1xf32>
    %84 = vector.extract_strided_slice %63 {offsets = [0, 3, 0], sizes = [1, 1, 16], strides = [1, 1, 1]} : vector<1x8x16xf32> to vector<1x1x16xf32>
    %85 = vector.broadcast %83 : vector<1x8x1xf32> to vector<1x8x16xf32>
    %86 = vector.broadcast %84 : vector<1x1x16xf32> to vector<1x8x16xf32>
    %87 = arith.mulf %85, %86 : vector<1x8x16xf32>
    %88 = arith.addf %82, %87 : vector<1x8x16xf32>
    %89 = vector.extract_strided_slice %62 {offsets = [0, 0, 4], sizes = [1, 8, 1], strides = [1, 1, 1]} : vector<1x8x8xf32> to vector<1x8x1xf32>
    %90 = vector.extract_strided_slice %63 {offsets = [0, 4, 0], sizes = [1, 1, 16], strides = [1, 1, 1]} : vector<1x8x16xf32> to vector<1x1x16xf32>
    %91 = vector.broadcast %89 : vector<1x8x1xf32> to vector<1x8x16xf32>
    %92 = vector.broadcast %90 : vector<1x1x16xf32> to vector<1x8x16xf32>
    %93 = arith.mulf %91, %92 : vector<1x8x16xf32>
    %94 = arith.addf %88, %93 : vector<1x8x16xf32>
    %95 = vector.extract_strided_slice %62 {offsets = [0, 0, 5], sizes = [1, 8, 1], strides = [1, 1, 1]} : vector<1x8x8xf32> to vector<1x8x1xf32>
    %96 = vector.extract_strided_slice %63 {offsets = [0, 5, 0], sizes = [1, 1, 16], strides = [1, 1, 1]} : vector<1x8x16xf32> to vector<1x1x16xf32>
    %97 = vector.broadcast %95 : vector<1x8x1xf32> to vector<1x8x16xf32>
    %98 = vector.broadcast %96 : vector<1x1x16xf32> to vector<1x8x16xf32>
    %99 = arith.mulf %97, %98 : vector<1x8x16xf32>
    %100 = arith.addf %94, %99 : vector<1x8x16xf32>
    %101 = vector.extract_strided_slice %62 {offsets = [0, 0, 6], sizes = [1, 8, 1], strides = [1, 1, 1]} : vector<1x8x8xf32> to vector<1x8x1xf32>
    %102 = vector.extract_strided_slice %63 {offsets = [0, 6, 0], sizes = [1, 1, 16], strides = [1, 1, 1]} : vector<1x8x16xf32> to vector<1x1x16xf32>
    %103 = vector.broadcast %101 : vector<1x8x1xf32> to vector<1x8x16xf32>
    %104 = vector.broadcast %102 : vector<1x1x16xf32> to vector<1x8x16xf32>
    %105 = arith.mulf %103, %104 : vector<1x8x16xf32>
    %106 = arith.addf %100, %105 : vector<1x8x16xf32>
    %107 = vector.extract_strided_slice %62 {offsets = [0, 0, 7], sizes = [1, 8, 1], strides = [1, 1, 1]} : vector<1x8x8xf32> to vector<1x8x1xf32>
    %108 = vector.extract_strided_slice %63 {offsets = [0, 7, 0], sizes = [1, 1, 16], strides = [1, 1, 1]} : vector<1x8x16xf32> to vector<1x1x16xf32>
    %109 = vector.broadcast %107 : vector<1x8x1xf32> to vector<1x8x16xf32>
    %110 = vector.broadcast %108 : vector<1x1x16xf32> to vector<1x8x16xf32>
    %111 = arith.mulf %109, %110 : vector<1x8x16xf32>
    %112 = arith.addf %106, %111 : vector<1x8x16xf32>
    %113 = vector.extract_strided_slice %49 {offsets = [0, 8], sizes = [8, 8], strides = [1, 1]} : vector<8x16xf32> to vector<8x8xf32>
    %cst_12 = arith.constant dense<0xFF800000> : vector<8xf32>
    %114 = vector.multi_reduction <maximumf>, %113, %cst_12 [1] : vector<8x8xf32> to vector<8xf32>
    %115 = vector.shape_cast %114 : vector<8xf32> to vector<8x1xf32>
    %116 = vector.broadcast %115 : vector<8x1xf32> to vector<8x8xf32>
    %117 = arith.subf %113, %116 : vector<8x8xf32>
    %118 = math.exp %117 : vector<8x8xf32>
    %cst_13 = arith.constant dense<0.000000e+00> : vector<8xf32>
    %119 = vector.multi_reduction <add>, %118, %cst_13 [1] : vector<8x8xf32> to vector<8xf32>
    %120 = vector.shape_cast %119 : vector<8xf32> to vector<8x1xf32>
    %cst_14 = arith.constant 1.000000e+00 : f32
    %121 = vector.broadcast %cst_14 : f32 to vector<8x1xf32>
    %122 = arith.divf %121, %120 : vector<8x1xf32>
    %123 = vector.broadcast %122 : vector<8x1xf32> to vector<8x8xf32>
    %124 = arith.mulf %118, %123 : vector<8x8xf32>
    %125 = vector.shape_cast %124 : vector<8x8xf32> to vector<1x8x8xf32>
    %126 = vector.extract_strided_slice %12 {offsets = [0, 0, 16], sizes = [1, 8, 16], strides = [1, 1, 1]} : vector<1x8x32xf32> to vector<1x8x16xf32>
    %127 = vector.extract_strided_slice %14 {offsets = [0, 0, 16], sizes = [1, 8, 16], strides = [1, 1, 1]} : vector<1x8x32xf32> to vector<1x8x16xf32>
    %128 = vector.extract_strided_slice %125 {offsets = [0, 0, 0], sizes = [1, 8, 1], strides = [1, 1, 1]} : vector<1x8x8xf32> to vector<1x8x1xf32>
    %129 = vector.extract_strided_slice %126 {offsets = [0, 0, 0], sizes = [1, 1, 16], strides = [1, 1, 1]} : vector<1x8x16xf32> to vector<1x1x16xf32>
    %130 = vector.broadcast %128 : vector<1x8x1xf32> to vector<1x8x16xf32>
    %131 = vector.broadcast %129 : vector<1x1x16xf32> to vector<1x8x16xf32>
    %132 = arith.mulf %130, %131 : vector<1x8x16xf32>
    %133 = arith.addf %127, %132 : vector<1x8x16xf32>
    %134 = vector.extract_strided_slice %125 {offsets = [0, 0, 1], sizes = [1, 8, 1], strides = [1, 1, 1]} : vector<1x8x8xf32> to vector<1x8x1xf32>
    %135 = vector.extract_strided_slice %126 {offsets = [0, 1, 0], sizes = [1, 1, 16], strides = [1, 1, 1]} : vector<1x8x16xf32> to vector<1x1x16xf32>
    %136 = vector.broadcast %134 : vector<1x8x1xf32> to vector<1x8x16xf32>
    %137 = vector.broadcast %135 : vector<1x1x16xf32> to vector<1x8x16xf32>
    %138 = arith.mulf %136, %137 : vector<1x8x16xf32>
    %139 = arith.addf %133, %138 : vector<1x8x16xf32>
    %140 = vector.extract_strided_slice %125 {offsets = [0, 0, 2], sizes = [1, 8, 1], strides = [1, 1, 1]} : vector<1x8x8xf32> to vector<1x8x1xf32>
    %141 = vector.extract_strided_slice %126 {offsets = [0, 2, 0], sizes = [1, 1, 16], strides = [1, 1, 1]} : vector<1x8x16xf32> to vector<1x1x16xf32>
    %142 = vector.broadcast %140 : vector<1x8x1xf32> to vector<1x8x16xf32>
    %143 = vector.broadcast %141 : vector<1x1x16xf32> to vector<1x8x16xf32>
    %144 = arith.mulf %142, %143 : vector<1x8x16xf32>
    %145 = arith.addf %139, %144 : vector<1x8x16xf32>
    %146 = vector.extract_strided_slice %125 {offsets = [0, 0, 3], sizes = [1, 8, 1], strides = [1, 1, 1]} : vector<1x8x8xf32> to vector<1x8x1xf32>
    %147 = vector.extract_strided_slice %126 {offsets = [0, 3, 0], sizes = [1, 1, 16], strides = [1, 1, 1]} : vector<1x8x16xf32> to vector<1x1x16xf32>
    %148 = vector.broadcast %146 : vector<1x8x1xf32> to vector<1x8x16xf32>
    %149 = vector.broadcast %147 : vector<1x1x16xf32> to vector<1x8x16xf32>
    %150 = arith.mulf %148, %149 : vector<1x8x16xf32>
    %151 = arith.addf %145, %150 : vector<1x8x16xf32>
    %152 = vector.extract_strided_slice %125 {offsets = [0, 0, 4], sizes = [1, 8, 1], strides = [1, 1, 1]} : vector<1x8x8xf32> to vector<1x8x1xf32>
    %153 = vector.extract_strided_slice %126 {offsets = [0, 4, 0], sizes = [1, 1, 16], strides = [1, 1, 1]} : vector<1x8x16xf32> to vector<1x1x16xf32>
    %154 = vector.broadcast %152 : vector<1x8x1xf32> to vector<1x8x16xf32>
    %155 = vector.broadcast %153 : vector<1x1x16xf32> to vector<1x8x16xf32>
    %156 = arith.mulf %154, %155 : vector<1x8x16xf32>
    %157 = arith.addf %151, %156 : vector<1x8x16xf32>
    %158 = vector.extract_strided_slice %125 {offsets = [0, 0, 5], sizes = [1, 8, 1], strides = [1, 1, 1]} : vector<1x8x8xf32> to vector<1x8x1xf32>
    %159 = vector.extract_strided_slice %126 {offsets = [0, 5, 0], sizes = [1, 1, 16], strides = [1, 1, 1]} : vector<1x8x16xf32> to vector<1x1x16xf32>
    %160 = vector.broadcast %158 : vector<1x8x1xf32> to vector<1x8x16xf32>
    %161 = vector.broadcast %159 : vector<1x1x16xf32> to vector<1x8x16xf32>
    %162 = arith.mulf %160, %161 : vector<1x8x16xf32>
    %163 = arith.addf %157, %162 : vector<1x8x16xf32>
    %164 = vector.extract_strided_slice %125 {offsets = [0, 0, 6], sizes = [1, 8, 1], strides = [1, 1, 1]} : vector<1x8x8xf32> to vector<1x8x1xf32>
    %165 = vector.extract_strided_slice %126 {offsets = [0, 6, 0], sizes = [1, 1, 16], strides = [1, 1, 1]} : vector<1x8x16xf32> to vector<1x1x16xf32>
    %166 = vector.broadcast %164 : vector<1x8x1xf32> to vector<1x8x16xf32>
    %167 = vector.broadcast %165 : vector<1x1x16xf32> to vector<1x8x16xf32>
    %168 = arith.mulf %166, %167 : vector<1x8x16xf32>
    %169 = arith.addf %163, %168 : vector<1x8x16xf32>
    %170 = vector.extract_strided_slice %125 {offsets = [0, 0, 7], sizes = [1, 8, 1], strides = [1, 1, 1]} : vector<1x8x8xf32> to vector<1x8x1xf32>
    %171 = vector.extract_strided_slice %126 {offsets = [0, 7, 0], sizes = [1, 1, 16], strides = [1, 1, 1]} : vector<1x8x16xf32> to vector<1x1x16xf32>
    %172 = vector.broadcast %170 : vector<1x8x1xf32> to vector<1x8x16xf32>
    %173 = vector.broadcast %171 : vector<1x1x16xf32> to vector<1x8x16xf32>
    %174 = arith.mulf %172, %173 : vector<1x8x16xf32>
    %175 = arith.addf %169, %174 : vector<1x8x16xf32>
    %176 = tpu.concatenate %112, %175 in 2 : vector<1x8x16xf32>, vector<1x8x16xf32> -> vector<1x8x32xf32>
    %cst_15 = arith.constant 0.000000e+00 : f32
    %177 = vector.broadcast %cst_15 : f32 to vector<1x8x32xf32>
    %178 = arith.maximumf %176, %177 : vector<1x8x32xf32>
    %c0_16 = arith.constant 0 : index
    %c0_17 = arith.constant 0 : index
    %c0_18 = arith.constant 0 : index
    %179 = vector.load %arg5[%c0_16, %c0_17, %c0_18] : memref<1x8x32xf32, #tpu.memory_space<vmem>>, vector<1x8x32xf32>
    tpu.vector_store %arg5[%c0_16, %c0_17, %c0_18], %178 {strides = array<i32>} : memref<1x8x32xf32, #tpu.memory_space<vmem>>, vector<1x8x32xf32>,
    return
  }
  func.func @transform_0(%arg0: i32) -> (i32, i32, i32) {
    %c0_i32 = arith.constant 0 : i32
    %c0_i32_0 = arith.constant 0 : i32
    %c0_i32_1 = arith.constant 0 : i32
    return %arg0, %c0_i32, %c0_i32_0 : i32, i32, i32
  }
  func.func @transform_1(%arg0: i32) -> (i32, i32) {
    %c0_i32 = arith.constant 0 : i32
    %c0_i32_0 = arith.constant 0 : i32
    %c0_i32_1 = arith.constant 0 : i32
    return %c0_i32, %c0_i32_0 : i32, i32
  }
  func.func @transform_2(%arg0: i32) -> (i32, i32) {
    %c0_i32 = arith.constant 0 : i32
    %c0_i32_0 = arith.constant 0 : i32
    %c0_i32_1 = arith.constant 0 : i32
    return %c0_i32, %c0_i32_0 : i32, i32
  }
  func.func @transform_3(%arg0: i32) -> (i32, i32) {
    %c0_i32 = arith.constant 0 : i32
    %c0_i32_0 = arith.constant 0 : i32
    %c0_i32_1 = arith.constant 0 : i32
    return %c0_i32, %c0_i32_0 : i32, i32
  }
  func.func @transform_4(%arg0: i32) -> (i32, i32, i32) {
    %c0_i32 = arith.constant 0 : i32
    %c0_i32_0 = arith.constant 0 : i32
    %c0_i32_1 = arith.constant 0 : i32
    return %arg0, %c0_i32, %c0_i32_0 : i32, i32, i32
  }
}

</mosaic_0001>

<bundles_post_ra>
// kernel: tpu_custom_call.1
= control target key start
LH: loop header
LB: loop body
LE: loop exit
PB: predicated region body
PF: predicated region fallthrough
CT: control target
= control target key end

     0   :  { %9 = vsyncpa [#allocation3], 0  ;;  %s1328_s0 = inlined_call_operand.vmem [shape: f32[2,8,32], index: 0, kind: input, shape index: {}]   ;;  %s1329_s1 = inlined_call_operand.vmem [shape: f32[32,128], index: 1, kind: input, shape index: {}]   ;;  %s1330_s2 = inlined_call_operand.vmem [shape: f32[1,128], index: 2, kind: input, shape index: {}]   ;;  %s1331_s3 = inlined_call_operand.vmem [shape: f32[256,16], index: 3, kind: input, shape index: {}]   ;;  %s1332_s4 = inlined_call_operand.hbm [shape: f32[2,8,32], index: 4, kind: output, shape index: {}]  }
   0x1   :  { %11 = vsyncpa [#allocation3 + $0x1], 0  ;;  %s1035_s15 = smov 0   ;;  %s1037_s16 = smov 0  }
   0x2   :  { %s1039_s17 = smov 0   ;;  %s1041_s18 = smov 0  }
   0x3 LB: > { %s1056_s19 = sadd.s32 4294967295, %s985_s18   ;;  %s762_s20 = sadd.s32 4294967294, %s985_s18   ;;  %s985_s18 = sphi %s1041_s18, %s1338_s18   ;;  %s981_s17 = sphi %s1039_s17, %s1337_s17   ;;  %s977_s16 = sphi %s1037_s16, %s1336_s16   ;;  %s973_s15 = sphi %s1035_s15, %s1335_s15  }
   0x4   : > { %s1060_s21 = sadd.s32 1, %s985_s18   ;;  %s113_s22 = sadd.s32 1, %s981_s17 }
   0x5   : > { %s110_s23 = ssub.s32 %s985_s18, %s1060_s21  ;;  %p123_p0 = scmp.ne.s32.totalorder %s981_s17, %s977_s16 }
   0x6   : > { %p111_p1 = scmp.eq.s32.totalorder %s110_s23, 0  ;;  %p124_p2 = scmp.eq.s32.totalorder %s1056_s19, 1 }
   0x7   : > { %p129_p3 = scmp.ne.s32.totalorder %s977_s16, %s973_s15  ;;  %p130_p4 = scmp.eq.s32.totalorder %s762_s20, 1 }
   0x8   : > { %s1071_s24 = scalar_select %p111_p1, %s981_s17, %s113_s22  }
   0x9   : > { %p1073_p5 = por %p124_p2, %p123_p0  ;;  %p1077_p6 = por %p130_p4, %p129_p3 }
   0xa   : > { %p765_p7 = scmp.ge.s32.totalorder %s985_s18, 1  ;;  %p164_p8 = scmp.lt.s32.totalorder %s985_s18, 3 }
   0xc   : > { %p165_p9 = pnand %p765_p7, %p164_p8 }
   0xd   : > { %p189_p10 = scmp.lt.s32.totalorder (!%p165_p9), %s1056_s19, 1  ;;  %s989_s29 = smov (!%p165_p9), 96  }
   0xe   : > { %168 = sbr.rel (%p165_p9) target bundleno = 1498 (0x5da), region = 36  ;;  %s990_s22 = smov (!%p165_p9), 32  }
   0xf   : > { %s991_s23 = smov (!%p165_p9), 64   ;;  %s186_s27 = sand.u32 (!%p165_p9), 1, %s977_s16  }
  0x10   : > { %s766_s28 = sshll.u32 (!%p165_p9), %s186_s27, 3  ;;  %s771_s30 = sshll.u32 (!%p165_p9), %s1056_s19, 7 }
  0x11   : > { %s701_s9 = scalar_lea.hbm (!%p165_p9), %s1332_s4, %s771_s30  ;;  %s690_s10 = scalar_lea.sflag (!%p165_p9), [#allocation3], %s186_s27 }
  0x13   : > { %v197_v0 = vld [vmem:[%s1329_s1 + $0x18] sm:$0xff]  ;;  %v987_v1 = vmov 0.0   ;;  %v196_v2 = vld [vmem:[%s1329_s1 + $0x10] sm:$0xff]  ;;  %vm988_vm0 = vmmov 0   ;;  %s190_s5 = scalar_select %p189_p10, %s1056_s19, 1  ;;  %v195_v3 = vld [vmem:[%s1329_s1 + $0x8] sm:$0xff]  ;;  %v279_v6 = vlaneseq }
  0x14   : > { %814 = vmatprep.subr.mxu0 %v987_v1  ;;  %822 = vmatprep.mubr.msk.f32.mxu0 %vm988_vm0, %v987_v1  ;;  %v194_v4 = vld [vmem:[%s1329_s1] sm:$0xff]  ;;  %vm205_vm1 = vcmask 261120   ;;  %v414_v18 = vld [vmem:[%s1331_s3 + $0xf8] sm:$0xff]  ;;  %v413_v20 = vld [vmem:[%s1331_s3 + $0xf0] sm:$0xff]  ;;  %vm376_vm2 = vcmask 523264   ;;  %vm378_vm3 = vcmask 785408  }
  0x15   : > { %815 = vmatpush3.msra.mxu0 %v197_v0  ;;  %s767_s8 = sshll.u32 %s190_s5, 3  ;;  %v280_v7 = vshrl.u32 %v279_v6, 7  ;;  %v768_v8 = vld [vmem:[%s1330_s2] ss:$0 sm:$0xff]  ;;  %v398_v19 = vld [vmem:[%s1331_s3 + $0x78] sm:$0xff]  ;;  %779 = vmatprep.subr.mxu1 %v414_v18  ;;  %v397_v25 = vld [vmem:[%s1331_s3 + $0x70] sm:$0xff] }
  0x16   : > { %816 = vmatprep.subr.mxu0 %v987_v1  ;;  %s192_s13 = scalar_lea.vmem %s1328_s0, %s767_s8  ;;  %780 = vmatpush3.msra.mxu1 %v398_v19  ;;  %v412_v26 = vld [vmem:[%s1331_s3 + $0xe8] sm:$0xff]  ;;  %v411_v32 = vld [vmem:[%s1331_s3 + $0xe0] sm:$0xff]  ;;  %v410_v34 = vld [vmem:[%s1331_s3 + $0xd8] sm:$0xff]  ;;  %vm579_vm4 = vcmask 130112   ;;  %vm485_vm5 = vcmask 64512   ;;  %vm685_vm6 = vcmask 130048  }
  0x17   : > { %817 = vmatpush3.msra.mxu0 %v196_v2  ;;  %v193_v5 = vld [vmem:[%s192_s13] sm:$0xff]  ;;  %v335_v9 = vsub.s32 6, %v280_v7  ;;  %v326_v10 = vsub.s32 5, %v280_v7  ;;  %v299_v16 = vsub.s32 2, %v280_v7  ;;  %v290_v17 = vsub.s32 1, %v280_v7  ;;  %781 = vmatprep.subr.mxu1 %v413_v20  ;;  %v396_v27 = vld [vmem:[%s1331_s3 + $0x68] sm:$0xff] }
  0x18   : > { %818 = vmatprep.subr.mxu0 %v987_v1  ;;  %v308_v23 = vsub.s32 3, %v280_v7  ;;  %v344_v24 = vsub.s32 7, %v280_v7  ;;  %782 = vmatpush3.msra.mxu1 %v397_v25  ;;  %v317_v30 = vsub.s32 4, %v280_v7  ;;  %v281_v31 = vsub.s32 0, %v280_v7  ;;  %v395_v33 = vld [vmem:[%s1331_s3 + $0x60] sm:$0xff]  ;;  %v394_v37 = vld [vmem:[%s1331_s3 + $0x58] sm:$0xff] }
  0x19   : > { %819 = vmatpush3.msra.mxu0 %v195_v3  ;;  %783 = vmatprep.subr.mxu1 %v412_v26  ;;  %v409_v38 = vld [vmem:[%s1331_s3 + $0xd0] sm:$0xff]  ;;  %v408_v40 = vld [vmem:[%s1331_s3 + $0xc8] sm:$0xff]  ;;  %v407_v42 = vld [vmem:[%s1331_s3 + $0xc0] sm:$0xff]  ;;  %s188_s5 = scalar_lea.vmem [#allocation2], %s766_s28  ;;  %s1009_s19 = smov [#allocation2]  }
  0x1a   : > { %820 = vmatprep.subr.mxu0 %v987_v1  ;;  %784 = vmatpush3.msra.mxu1 %v396_v27  ;;  %v393_v39 = vld [vmem:[%s1331_s3 + $0x50] sm:$0xff]  ;;  %v392_v41 = vld [vmem:[%s1331_s3 + $0x48] sm:$0xff]  ;;  %v391_v43 = vld [vmem:[%s1331_s3 + $0x40] sm:$0xff]  ;;  %s703_s6 = sshll.u32 %s188_s5, 4  ;;  %s929_s12 = sshll.u32 %s1009_s19, 4  ;;  %s704_s6 = int_to_ptr.vmem [resolvable:$true] %s703_s6  ;;  %s930_s12 = int_to_ptr.vmem [resolvable:$false] %s929_s12 }
  0x1b   : > { %821 = vmatpush3.msra.mxu0 %v194_v4  ;;  %785 = vmatprep.subr.mxu1 %v411_v32  ;;  %v406_v44 = vld [vmem:[%s1331_s3 + $0xb8] sm:$0xff]  ;;  %v405_v46 = vld [vmem:[%s1331_s3 + $0xb0] sm:$0xff]  ;;  %v404_v48 = vld [vmem:[%s1331_s3 + $0xa8] sm:$0xff]  ;;  %s925_s11 = scalar_lea.vmem %s704_s6, 128  ;;  %s931_s13 = scalar_lea.vmem %s930_s12, 256 }
  0x1c   : > { %823 = vmatmul.mubr.msk.f32.vlgmr.msra.gmra.mxu0 %vm205_vm1, %v193_v5  ;;  %786 = vmatpush3.msra.mxu1 %v395_v33  ;;  %v390_v45 = vld [vmem:[%s1331_s3 + $0x38] sm:$0xff]  ;;  %v389_v47 = vld [vmem:[%s1331_s3 + $0x30] sm:$0xff]  ;;  %v388_v49 = vld [vmem:[%s1331_s3 + $0x28] sm:$0xff]  ;;  %p926_p11 = scmp.ne.s32.totalorder %s704_s6, %s925_s11  ;;  %p932_p0 = scmp.lt.s32.totalorder %s704_s6, %s930_s12 }
  0x1d   : > { %787 = vmatprep.subr.mxu1 %v410_v34  ;;  %v403_v50 = vld [vmem:[%s1331_s3 + $0xa0] sm:$0xff]  ;;  %v402_v52 = vld [vmem:[%s1331_s3 + $0x98] sm:$0xff]  ;;  %v401_v54 = vld [vmem:[%s1331_s3 + $0x90] sm:$0xff]  ;;  %p933_p1 = scmp.lt.s32.totalorder %s931_s13, %s925_s11 }
  0x1e   : > { %788 = vmatpush3.msra.mxu1 %v394_v37  ;;  %v387_v51 = vld [vmem:[%s1331_s3 + $0x20] sm:$0xff]  ;;  %v386_v53 = vld [vmem:[%s1331_s3 + $0x18] sm:$0xff]  ;;  %v385_v55 = vld [vmem:[%s1331_s3 + $0x10] sm:$0xff]  ;;  %p927_p12 = pnand %p926_p11, %p1073_p5 }
  0x1f   : > { %789 = vmatprep.subr.mxu1 %v409_v38  ;;  %v400_v58 = vld [vmem:[%s1331_s3 + $0x88] sm:$0xff]  ;;  %v399_v60 = vld [vmem:[%s1331_s3 + $0x80] sm:$0xff]  ;;  %p934_p2 = por %p933_p1, %p932_p0 }
  0x20   : > { %790 = vmatpush3.msra.mxu1 %v393_v39  ;;  %v384_v59 = vld [vmem:[%s1331_s3 + $0x8] sm:$0xff]  ;;  %v383_v61 = vld [vmem:[%s1331_s3] sm:$0xff]  ;;  %p928_p13 = pneg %p927_p12 }
  0x21   : > { %791 = vmatprep.subr.mxu1 %v408_v40 }
  0x22   : > { %792 = vmatpush3.msra.mxu1 %v392_v41  ;;  %p935_p3 = pnand %p934_p2, %p928_p13 }
  0x23   : > { %793 = vmatprep.subr.mxu1 %v407_v42 }
  0x24   : > { %794 = vmatpush3.msra.mxu1 %v391_v43 }
  0x25   : > { %795 = vmatprep.subr.mxu1 %v406_v44 }
  0x26   : > { %796 = vmatpush3.msra.mxu1 %v390_v45 }
  0x27   : > { %797 = vmatprep.subr.mxu1 %v405_v46 }
  0x28   : > { %798 = vmatpush3.msra.mxu1 %v389_v47 }
  0x29   : > { %799 = vmatprep.subr.mxu1 %v404_v48 }
  0x2a   : > { %800 = vmatpush3.msra.mxu1 %v388_v49 }
  0x2b   : > { %801 = vmatprep.subr.mxu1 %v403_v50 }
  0x2c   : > { %802 = vmatpush3.msra.mxu1 %v387_v51 }
  0x2d   : > { %803 = vmatprep.subr.mxu1 %v402_v52 }
  0x2e   : > { %804 = vmatpush3.msra.mxu1 %v386_v53  ;;  %v993_v53 = vmov 3  }
  0x2f   : > { %805 = vmatprep.subr.mxu1 %v401_v54  ;;  %904 = vset.pattern.permute.xlu0 %v993_v53  ;;  %v994_v54 = vmov 0  }
  0x30   : > { %806 = vmatpush3.msra.mxu1 %v385_v55  ;;  %901 = vset.pattern.permute.xlu1 %v994_v54 }
  0x31   : > { %807 = vmatprep.subr.mxu1 %v400_v58 }
  0x32   : > { %808 = vmatpush3.msra.mxu1 %v384_v59 }
  0x33   : > { %809 = vmatprep.subr.mxu1 %v399_v60  ;;  %v995_v60 = vmov 6  }
  0x34   : > { %810 = vmatpush3.msra.mxu1 %v383_v61  ;;  %v996_v61 = vmov 1  }
  0xdc   : > { %v275_v11 = vpop.f32.mrf.mxu0 }
  0xdd   : > { %v1104_v12 = vadd.f32 %v768_v8, %v275_v11 }
  0xde   : > { %v824_v13 = vpop.f32.mrf.mxu0 }
  0xdf   : > { %v1107_v14 = vrot.slane %v1104_v12, %v335_v9  ;;  %v1110_v15 = vrot.slane %v1104_v12, %v326_v10  ;;  %v1126_v21 = vrot.slane %v1104_v12, %v299_v16  ;;  %v1129_v22 = vrot.slane %v1104_v12, %v290_v17 }
  0xe0   : > { %v1145_v28 = vrot.slane %v1104_v12, %v308_v23  ;;  %v1148_v29 = vrot.slane %v1104_v12, %v344_v24  ;;  %v1164_v35 = vrot.slane %v1104_v12, %v317_v30  ;;  %v1167_v36 = vrot.slane %v1104_v12, %v281_v31 }
  0xe1   : > { %338 = vrot.lane.b32.xlu1 %v1107_v14, %s989_s29  ;;  %329 = vrot.lane.b32.xlu0 %v1110_v15, %s989_s29 }
  0xe5   : > { %302 = vrot.lane.b32.xlu1 %v1126_v21, %s989_s29  ;;  %293 = vrot.lane.b32.xlu0 %v1129_v22, %s989_s29 }
  0xe9   : > { %311 = vrot.lane.b32.xlu1 %v1145_v28, %s989_s29  ;;  %347 = vrot.lane.b32.xlu0 %v1148_v29, %s989_s29 }
  0xed   : > { %320 = vrot.lane.b32.xlu0 %v1164_v35, %s989_s29  ;;  %284 = vrot.lane.b32.xlu1 %v1167_v36, %s989_s29 }
 0x153   : > { %v339_v56 = vpop.permute.xlu1 %338  ;;  %v330_v57 = vpop.permute.xlu0 %329 }
 0x154   : > { %v341_v0 = vmul.f32 %v339_v56, %v1104_v12  ;;  %v332_v1 = vmul.f32 %v330_v57, %v1104_v12 }
 0x157   : > { %v303_v62 = vpop.permute.xlu1 %302  ;;  %v294_v63 = vpop.permute.xlu0 %293 }
 0x158   : > { %v305_v2 = vmul.f32 %v303_v62, %v1104_v12  ;;  %v296_v3 = vmul.f32 %v294_v63, %v1104_v12  ;;  %v997_v62 = vmov 2   ;;  %v998_v63 = vmov 8  }
 0x15a   : > { %v891_v4 = vpack.i.bf16 %v305_v2, %v341_v0  ;;  %v886_v5 = vpack.i.bf16 %v296_v3, %v332_v1  ;;  %v999_v0 = vmov 4   ;;  %v1000_v1 = vmov 5  }
 0x15b   : > { %v312_v6 = vpop.permute.xlu1 %311  ;;  %v348_v7 = vpop.permute.xlu0 %347  ;;  %v1001_v2 = vmov 10  }
 0x15c   : > { %v314_v8 = vmul.f32 %v312_v6, %v1104_v12  ;;  %v350_v9 = vmul.f32 %v348_v7, %v1104_v12  ;;  %887 = vrot.lane.b32.xlu0 %v886_v5, %s990_s22  ;;  %892 = vrot.lane.b32.xlu1 %v891_v4, %s991_s23  ;;  %v1002_v6 = vmov 11   ;;  %v1003_v7 = vmov 9  }
 0x15e   : > { %v896_v10 = vpack.i.bf16 %v314_v8, %v350_v9  ;;  %v1004_v9 = vmov 13  }
 0x15f   : > { %v321_v11 = vpop.permute.xlu0 %320  ;;  %v285_v13 = vpop.permute.xlu1 %284 }
 0x160   : > { %897 = vrot.lane.b32.xlu0 %v896_v10, %s989_s29  ;;  %v323_v18 = vmul.f32 %v321_v11, %v1104_v12  ;;  %v287_v19 = vmul.f32 %v285_v13, %v1104_v12  ;;  %s992_s29 = smov 120   ;;  %v1005_v10 = vmov 12   ;;  %v1006_v13 = vmov 14  }
 0x1ce   : > { %v888_v16 = vpop.permute.xlu0 %887  ;;  %v893_v17 = vpop.permute.xlu1 %892 }
 0x1cf   : > { %v890_v20 = vunpack.i.h.bf16 %v888_v16  ;;  %v889_v23 = vunpack.i.l.bf16 %v888_v16  ;;  %v895_v24 = vunpack.i.h.bf16 %v893_v17  ;;  %v894_v25 = vunpack.i.l.bf16 %v893_v17 }
 0x1d0   : > { %v1007_v16 = vmov 15  }
 0x1d1   : > { %v380_v26 = vsel %vm205_vm1, %v323_v18, %v889_v23  ;;  %v375_v27 = vsel %vm205_vm1, %v287_v19, %v890_v20  ;;  %v1008_v19 = vmov 7  }
 0x1d2   : > { %v898_v30 = vpop.permute.xlu0 %897  ;;  %v381_v33 = vsel %vm376_vm2, %v380_v26, %v894_v25  ;;  %v377_v34 = vsel %vm376_vm2, %v375_v27, %v895_v24 }
 0x1d3   : > { %v900_v31 = vunpack.i.h.bf16 %v898_v30  ;;  %v899_v32 = vunpack.i.l.bf16 %v898_v30 }
 0x1d5   : > { %v382_v37 = vsel %vm378_vm3, %v381_v33, %v899_v32  ;;  %v379_v38 = vsel %vm378_vm3, %v377_v34, %v900_v31 }
 0x1d6   : > { %479 = vmatprep.mubr.f32.mxu1 %v382_v37 }
 0x1d7   : > { %480 = vmatmul.mubr.f32.vlgmr.msra.gmra.mxu1 %v379_v38 }
 0x297   : > { %v811_v39 = vpop.f32.mrf.mxu1 }
 0x299   : > { %v812_v40 = vpop.f32.mrf.mxu1 }
 0x29a   : > { %v813_v41 = vadd.f32 %v812_v40, %v811_v39 }
 0x29c   : > { %v580_v42 = vsel %vm579_vm4, %v813_v41, -inf  ;;  %v486_v43 = vsel %vm485_vm5, %v813_v41, -inf }
 0x29d   : > { %581 = vmax.xlane.f32.xlu1 %v580_v42  ;;  %487 = vmax.xlane.f32.xlu0 %v486_v43 }
 0x326   : > { %v582_v44 = vpop.xlane.xlu1 %581  ;;  %v488_v45 = vpop.xlane.xlu0 %487 }
 0x327   : > { %v583_v46 = vsub.f32 %v813_v41, %v582_v44  ;;  %v489_v47 = vsub.f32 %v813_v41, %v488_v45 }
 0x329   : > { %v584_v48 = vmul.f32 1.442695, %v583_v46  ;;  %v490_v49 = vmul.f32 1.442695, %v489_v47 }
 0x32b   : > { %917 = vpow2.f32 %v584_v48 }
 0x32c   : > { %919 = vpow2.f32 %v490_v49 }
 0x338   : > { %v918_v50 = vpop.eup %917 }
 0x339   : > { %v920_v51 = vpop.eup %919  ;;  %587 = vrot.lane.b32.xlu0 %v918_v50, %s992_s29 }
 0x33a   : > { %v492_v52 = vsel %vm485_vm5, %v920_v51, 0.0 }
 0x33b   : > { %493 = vadd.xlane.f32.xlu1 %v492_v52 }
 0x3ab   : > { %v588_v55 = vpop.permute.xlu0 %587 }
 0x3ac   : > { %v590_v56 = vsel %vm485_vm5, %v588_v55, 0.0 }
 0x3ad   : > { %591 = vadd.xlane.f32.xlu1 %v590_v56 }
 0x3c4   : > { %v494_v57 = vpop.xlane.xlu1 %493 }
 0x3c5   : > { %921 = vrcp.f32 %v494_v57 }
 0x3d2   : > { %v922_v58 = vpop.eup %921 }
 0x3d3   : > { %v497_v59 = vmul.f32 %v922_v58, %v920_v51 }
 0x3d5   : > { %530 = vperm.xlu0 %904, %v497_v59   ;;  %500 = vperm.xlu1 %901, %v497_v59  }
 0x3d9   : > { %907 = vset.pattern.permute.xlu0 %v995_v60  ;;  %902 = vset.pattern.permute.xlu1 %v996_v61 }
 0x3da   : > { %560 = vperm.xlu0 %907, %v497_v59   ;;  %510 = vperm.xlu1 %902, %v497_v59  }
 0x3de   : > { %903 = vset.pattern.permute.xlu1 %v997_v62  ;;  %908 = vset.pattern.permute.xlu0 %v998_v63 }
 0x3df   : > { %520 = vperm.xlu1 %903, %v497_v59  }
 0x3e3   : > { %905 = vset.pattern.permute.xlu1 %v999_v0 }
 0x3e4   : > { %540 = vperm.xlu1 %905, %v497_v59  }
 0x3e8   : > { %906 = vset.pattern.permute.xlu1 %v1000_v1 }
 0x3e9   : > { %550 = vperm.xlu1 %906, %v497_v59  }
 0x3ed   : > { %910 = vset.pattern.permute.xlu1 %v1001_v2 }
 0x436   : > { %v592_v3 = vpop.xlane.xlu1 %591 }
 0x437   : > { %923 = vrcp.f32 %v592_v3 }
 0x444   : > { %v924_v4 = vpop.eup %923 }
 0x445   : > { %v595_v5 = vmul.f32 %v924_v4, %v918_v50 }
 0x447   : > { %618 = vperm.xlu1 %910, %v595_v5   ;;  %598 = vperm.xlu0 %908, %v595_v5  }
 0x44b   : > { %911 = vset.pattern.permute.xlu1 %v1002_v6  ;;  %909 = vset.pattern.permute.xlu0 %v1003_v7 }
 0x44c   : > { %628 = vperm.xlu1 %911, %v595_v5   ;;  %608 = vperm.xlu0 %909, %v595_v5  }
 0x450   : > { %v501_v8 = vpop.permute.xlu1 %500  ;;  %913 = vset.pattern.permute.xlu1 %v1004_v9  ;;  %912 = vset.pattern.permute.xlu0 %v1005_v10  ;;  %v531_v24 = vpop.permute.xlu0 %530 }
 0x451   : > { %648 = vperm.xlu1 %913, %v595_v5   ;;  %638 = vperm.xlu0 %912, %v595_v5   ;;  %v503_v23 = vmul.f32 %v501_v8, %v1167_v36  ;;  %v533_v26 = vmul.f32 %v531_v24, %v1145_v28 }
 0x455   : > { %v511_v11 = vpop.permute.xlu1 %510  ;;  %914 = vset.pattern.permute.xlu1 %v1006_v13  ;;  %916 = vset.pattern.permute.xlu0 %v1007_v16  ;;  %v561_v32 = vpop.permute.xlu0 %560 }
 0x456   : > { %658 = vperm.xlu1 %914, %v595_v5   ;;  %668 = vperm.xlu0 %916, %v595_v5   ;;  %v513_v17 = vmul.f32 %v511_v11, %v1129_v22  ;;  %v563_v33 = vmul.f32 %v561_v32, %v1107_v14 }
 0x45a   : > { %v521_v18 = vpop.permute.xlu1 %520  ;;  %915 = vset.pattern.permute.xlu1 %v1008_v19  ;;  %515 = vrot.lane.b32.xlu0 %v513_v17, %s990_s22 }
 0x45b   : > { %570 = vperm.xlu1 %915, %v497_v59   ;;  %v523_v20 = vmul.f32 %v521_v18, %v1126_v21 }
 0x45e   : > { %525 = vrot.lane.b32.xlu0 %v523_v20, %s990_s22 }
 0x45f   : > { %v541_v25 = vpop.permute.xlu1 %540  ;;  %505 = vrot.lane.b32.xlu1 %v503_v23, %s990_s22 }
 0x460   : > { %v543_v27 = vmul.f32 %v541_v25, %v1164_v35 }
 0x462   : > { %535 = vrot.lane.b32.xlu0 %v533_v26, %s990_s22 }
 0x464   : > { %v551_v30 = vpop.permute.xlu1 %550 }
 0x465   : > { %v553_v31 = vmul.f32 %v551_v30, %v1110_v15 }
 0x466   : > { %545 = vrot.lane.b32.xlu0 %v543_v27, %s990_s22 }
 0x46a   : > { %555 = vrot.lane.b32.xlu0 %v553_v31, %s990_s22 }
 0x46e   : > { %565 = vrot.lane.b32.xlu0 %v563_v33, %s990_s22 }
 0x4c2   : > { %v619_v34 = vpop.permute.xlu1 %618  ;;  %v599_v37 = vpop.permute.xlu0 %598 }
 0x4c3   : > { %v601_v38 = vmul.f32 %v599_v37, %v1167_v36  ;;  %v621_v42 = vmul.f32 %v619_v34, %v1126_v21 }
 0x4c5   : > { %603 = vrot.lane.b32.xlu1 %v601_v38, %s990_s22 }
 0x4c7   : > { %v629_v39 = vpop.permute.xlu1 %628  ;;  %v609_v40 = vpop.permute.xlu0 %608 }
 0x4c8   : > { %v611_v41 = vmul.f32 %v609_v40, %v1129_v22  ;;  %v631_v44 = vmul.f32 %v629_v39, %v1145_v28 }
 0x4ca   : > { %613 = vrot.lane.b32.xlu1 %v611_v41, %s990_s22 }
 0x4cc   : > { %v649_v43 = vpop.permute.xlu1 %648  ;;  %v639_v45 = vpop.permute.xlu0 %638 }
 0x4cd   : > { %v641_v36 = vmul.f32 %v639_v45, %v1164_v35  ;;  %v651_v48 = vmul.f32 %v649_v43, %v1110_v15 }
 0x4ce   : > { %623 = vrot.lane.b32.xlu1 %v621_v42, %s990_s22 }
 0x4d1   : > { %v659_v46 = vpop.permute.xlu1 %658  ;;  %v669_v28 = vpop.permute.xlu0 %668 }
 0x4d2   : > { %633 = vrot.lane.b32.xlu1 %v631_v44, %s990_s22  ;;  %v661_v21 = vmul.f32 %v659_v46, %v1107_v14  ;;  %v671_v49 = vmul.f32 %v669_v28, %v1148_v29 }
 0x4d5   : > { %v516_v35 = vpop.permute.xlu0 %515 }
 0x4d6   : > { %v571_v47 = vpop.permute.xlu1 %570  ;;  %643 = vrot.lane.b32.xlu1 %v641_v36, %s990_s22 }
 0x4d7   : > { %v573_v22 = vmul.f32 %v571_v47, %v1148_v29 }
 0x4d9   : > { %575 = vrot.lane.b32.xlu0 %v573_v22, %s990_s22  ;;  %v526_v50 = vpop.permute.xlu0 %525 }
 0x4da   : > { %653 = vrot.lane.b32.xlu1 %v651_v48, %s990_s22  ;;  %v506_v51 = vpop.permute.xlu1 %505 }
 0x4db   : > { %v508_v52 = vadd.f32 %v506_v51, %v1104_v12 }
 0x4dd   : > { %v536_v53 = vpop.permute.xlu0 %535  ;;  %v518_v54 = vadd.f32 %v516_v35, %v508_v52 }
 0x4de   : > { %663 = vrot.lane.b32.xlu1 %v661_v21, %s990_s22 }
 0x4df   : > { %v528_v56 = vadd.f32 %v526_v50, %v518_v54 }
 0x4e1   : > { %v546_v55 = vpop.permute.xlu0 %545  ;;  %v538_v58 = vadd.f32 %v536_v53, %v528_v56 }
 0x4e2   : > { %673 = vrot.lane.b32.xlu1 %v671_v49, %s990_s22 }
 0x4e3   : > { %v548_v60 = vadd.f32 %v546_v55, %v538_v58 }
 0x4e5   : > { %v556_v59 = vpop.permute.xlu0 %555 }
 0x4e6   : > { %v558_v63 = vadd.f32 %v556_v59, %v548_v60 }
 0x4e9   : > { %v566_v62 = vpop.permute.xlu0 %565 }
 0x4ea   : > { %v568_v2 = vadd.f32 %v566_v62, %v558_v63 }
 0x537   : > { %v604_v15 = vpop.permute.xlu1 %603 }
 0x538   : > { %v606_v29 = vadd.f32 %v604_v15, %v1104_v12 }
 0x53c   : > { %v614_v57 = vpop.permute.xlu1 %613 }
 0x53d   : > { %v616_v1 = vadd.f32 %v614_v57, %v606_v29 }
 0x540   : > { %v624_v14 = vpop.permute.xlu1 %623 }
 0x541   : > { %v626_v3 = vadd.f32 %v624_v14, %v616_v1 }
 0x544   : > { %v634_v61 = vpop.permute.xlu1 %633 }
 0x545   : > { %v636_v7 = vadd.f32 %v634_v61, %v626_v3 }
 0x548   : > { %v644_v0 = vpop.permute.xlu1 %643 }
 0x549   : > { %v646_v8 = vadd.f32 %v644_v0, %v636_v7 }
 0x54b   : > { %v576_v4 = vpop.permute.xlu0 %575 }
 0x54c   : > { %v578_v5 = vadd.f32 %v576_v4, %v568_v2  ;;  %v654_v6 = vpop.permute.xlu1 %653 }
 0x54d   : > { %v656_v10 = vadd.f32 %v654_v6, %v646_v8 }
 0x54e   : > { %678 = vrot.lane.b32.xlu0 %v578_v5, %s990_s22 }
 0x550   : > { %v664_v9 = vpop.permute.xlu1 %663 }
 0x551   : > { %v666_v11 = vadd.f32 %v664_v9, %v656_v10 }
 0x554   : > { %v674_v13 = vpop.permute.xlu1 %673 }
 0x555   : > { %v676_v16 = vadd.f32 %v674_v13, %v666_v11 }
 0x557   : > { %682 = vrot.lane.b32.xlu1 %v676_v16, %s990_s22 }
 0x5c0   : > { %v679_v12 = vpop.permute.xlu0 %678 }
 0x5c9   : > { %v683_v17 = vpop.permute.xlu1 %682 }
 0x5ca   : > { %v686_v18 = vsel %vm685_vm6, %v679_v12, %v683_v17 }
 0x5cb   : > { %v687_v19 = vmax.f32 %v686_v18, 0.0 }
 0x5cd   : > { %688 = vst.msk [vmem:[%s188_s5] sm:$0xff] %vm205_vm1, %v687_v19 }
 0x5ce   : > { %938 = shalt.err (!%p935_p3)
}
 0x5cf   : > { %s939_s14 = scalar_lea.hbm %s701_s9, 128  ;;  %s943_s23 = scalar_lea.hbm %s1332_s4, 256 }
 0x5d0   : > { %p940_p4 = scmp.ne.s32.totalorder %s701_s9, %s939_s14  ;;  %p944_p9 = scmp.lt.s32.totalorder %s701_s9, %s1332_s4 }
 0x5d1   : > { %p945_p10 = scmp.lt.s32.totalorder %s943_s23, %s939_s14 }
 0x5d2   : > { %p941_p7 = pnand %p940_p4, %p1073_p5 }
 0x5d3   : > { %p946_p11 = por %p945_p10, %p944_p9 }
 0x5d4   : > { %p942_p8 = pneg %p941_p7 }
 0x5d6   : > { %p947_p12 = pnand %p946_p11, %p942_p8 }
 0x5d8   : > { %950 = shalt.err (!%p947_p12)
}
 0x5d9   : > { %825 = dma.vmem_to_hbm [thread:$0]  (%p1073_p5), %s704_s6, 128, %s701_s9, %s690_s10  }
 0x5da PF: > { %p831_p13 = scmp.ge.s32.totalorder %s985_s18, 2  ;;  %s715_s28 = sand.u32 1, %s973_s15  }
 0x5db   : > { %s716_s30 = scalar_lea.sflag [#allocation3], %s715_s28 }
 0x5dc   : > { %p828_p0 = pnand %p831_p13, %p1077_p6 }
 0x5de   : > { %p829_p1 = pneg %p828_p0 }
 0x5e0   : > { %968 = dma.done.wait (%p829_p1), %s716_s30, 128  }
 0x5e1   : > { %970 = vsyncadd (%p829_p1), %s716_s30, 4294967168  ;;  %p14_p2 = scmp.ge.s32.totalorder %s1060_s21, 4   ;;  %s1335_s15 = smov %s977_s16 }
 0x5e2   : > { %s1336_s16 = smov %s981_s17  ;;  %s1337_s17 = smov %s1071_s24 }
 0x5e3   : > { %s1338_s18 = smov %s1060_s21  ;;  %16 = sbr.rel (!%p14_p2) target bundleno = 3 (0x3), region = 71 }
 0x5e8   :  { %721 = vsyncpa [#allocation3], 1 }
 0x5e9   :  { %723 = vsyncpa [#allocation3 + $0x1], 1 }

</bundles_post_ra>
